<compile_context>
chip_gen: v7x
topology: tpu7x:2x2x1
jax: 0.10.0
libtpu: 0.0.40
codegen_flags: <defaults>
</compile_context>

<pallas_src>
import jax
import jax.numpy as jnp
from jax.experimental import pallas as pl
from jax.experimental.pallas import tpu as pltpu


def make_basic_block_kernel(H, W, Cin, Cout):
    HW = H * W
    INT = W + 1              # halo length on each side of the flat interior
    L = HW + 2 * INT         # padded flat length

    def kernel(x_ref, w1_ref, w2_ref, s1_ref, b1_ref, s2_ref, b2_ref,
               out_ref, xpad_ref, mid_ref):
        # --- refresh only the 1-pixel halo (tiny, megacore-safe) and place
        #     this batch's activations in the scratch interior ---------------
        zin = jnp.zeros((Cin, INT), jnp.float32)
        zout = jnp.zeros((Cout, INT), jnp.float32)
        xpad_ref[:, 0:INT] = zin
        xpad_ref[:, INT + HW:L] = zin
        mid_ref[:, 0:INT] = zout
        mid_ref[:, INT + HW:L] = zout

        xv = x_ref[...]                              # [Cin, HW]; reused as residual
        xpad_ref[:, INT:INT + HW] = xv

        # lane masks that zero the columns lost to the flattened-row layout
        col = jax.lax.broadcasted_iota(jnp.int32, (1, HW), 1) % W
        not_left = (col > 0).astype(jnp.float32)     # taps with dx offset -1
        not_right = (col < W - 1).astype(jnp.float32)  # taps with dx offset +1

        def im2col(padded):                          # padded: [C, L] value
            rows = []
            for dy in range(3):
                for dx in range(3):
                    s = dy * W + dx
                    patch = padded[:, s:s + HW]      # [C, HW]
                    if dx == 0:
                        patch = patch * not_left
                    elif dx == 2:
                        patch = patch * not_right
                    rows.append(patch)
            return jnp.concatenate(rows, axis=0)     # [9*C, HW]

        # --- conv1 -> bn1 -> relu  (single deep-K MXU matmul) ---------------
        y = jnp.dot(w1_ref[...], im2col(xpad_ref[...]),
                    preferred_element_type=jnp.float32)       # [Cout, HW]
        y = jnp.maximum(y * s1_ref[...] + b1_ref[...], 0.0)

        # --- conv2 -> bn2 -> +residual -> relu ------------------------------
        mid_ref[:, INT:INT + HW] = y
        z = jnp.dot(w2_ref[...], im2col(mid_ref[...]),
                    preferred_element_type=jnp.float32)       # [Cout, HW]
        z = z * s2_ref[...] + b2_ref[...]
        # TODO(synk): downsample=None / stride=1 path only (Cin == Cout); a
        # projection or strided shortcut would need its own matmul here.
        z = z + xv
        out_ref[...] = jnp.maximum(z, 0.0)

    return kernel


def basic_block(x_nchw, w1, w2, bn1, bn2, eps=1e-5):
    """x_nchw: [N, C, H, W]; w1/w2: [3, 3, Cin, Cout] (HWIO);
    bn = (gamma, beta, running_mean, running_var)."""
    # TODO(synk): PyTorch BatchNorm2d in training mode uses batch statistics;
    # here we implement the (deterministic) eval-mode affine fold.
    N, Cin, H, W = x_nchw.shape
    Cout = w1.shape[-1]
    HW = H * W
    L = HW + 2 * (W + 1)

    x_flat = x_nchw.reshape(N, Cin, HW).astype(jnp.float32)
    # HWIO -> [Cout, (dy,dx,cin)] matching the in-kernel im2col row order.
    w1_mat = jnp.transpose(w1, (3, 0, 1, 2)).reshape(Cout, 9 * Cin).astype(jnp.float32)
    w2_mat = jnp.transpose(w2, (3, 0, 1, 2)).reshape(Cout, 9 * Cout).astype(jnp.float32)

    def fold(bn):
        g, b, m, v = bn
        s = g / jnp.sqrt(v + eps)
        return (s.reshape(-1, 1).astype(jnp.float32),
                (b - m * s).reshape(-1, 1).astype(jnp.float32))

    s1, b1 = fold(bn1)
    s2, b2 = fold(bn2)

    kernel = make_basic_block_kernel(H, W, Cin, Cout)

    out = pl.pallas_call(
        kernel,
        out_shape=jax.ShapeDtypeStruct((N, Cout, HW), jnp.float32),
        grid_spec=pltpu.PrefetchScalarGridSpec(
            num_scalar_prefetch=0,
            grid=(N,),
            in_specs=[
                pl.BlockSpec((None, Cin, HW), lambda n: (n, 0, 0)),   # activations
                pl.BlockSpec((Cout, 9 * Cin), lambda n: (0, 0)),      # w1
                pl.BlockSpec((Cout, 9 * Cout), lambda n: (0, 0)),     # w2
                pl.BlockSpec((Cout, 1), lambda n: (0, 0)),            # bn1 scale
                pl.BlockSpec((Cout, 1), lambda n: (0, 0)),            # bn1 bias
                pl.BlockSpec((Cout, 1), lambda n: (0, 0)),            # bn2 scale
                pl.BlockSpec((Cout, 1), lambda n: (0, 0)),            # bn2 bias
            ],
            out_specs=pl.BlockSpec((None, Cout, HW), lambda n: (n, 0, 0)),
            scratch_shapes=[
                pltpu.VMEM((Cin, L), jnp.float32),    # zero-haloed input
                pltpu.VMEM((Cout, L), jnp.float32),   # zero-haloed conv1 output
            ],
        ),
        compiler_params=pltpu.CompilerParams(
            dimension_semantics=("parallel",)),
    )(x_flat, w1_mat, w2_mat, s1, b1, s2, b2)
    return out.reshape(N, Cout, H, W)


def basic_block_reference(x_nchw, w1, w2, bn1, bn2, eps=1e-5):
    x = jnp.transpose(x_nchw, (0, 2, 3, 1))

    def conv(inp, w):
        return jax.lax.conv_general_dilated(
            inp, w, window_strides=(1, 1), padding="SAME",
            dimension_numbers=("NHWC", "HWIO", "NHWC"))

    def bn(inp, p):
        g, b, m, v = p
        return (inp - m) / jnp.sqrt(v + eps) * g + b

    out = jax.nn.relu(bn(conv(x, w1), bn1))
    out = bn(conv(out, w2), bn2) + x
    out = jax.nn.relu(out)
    return jnp.transpose(out, (0, 3, 1, 2))


if __name__ == "__main__":
    N, C, H, W = 2, 4, 16, 16       # inplanes = planes = 4, stride = 1
    keys = jax.random.split(jax.random.PRNGKey(0), 12)

    x = jax.random.normal(keys[0], (N, C, H, W), jnp.float32)
    w1 = jax.random.normal(keys[1], (3, 3, C, C), jnp.float32) * 0.1
    w2 = jax.random.normal(keys[2], (3, 3, C, C), jnp.float32) * 0.1
    bn1 = (jax.random.uniform(keys[3], (C,), minval=0.5, maxval=1.5),
           jax.random.normal(keys[4], (C,)) * 0.1,
           jax.random.normal(keys[5], (C,)) * 0.1,
           jax.random.uniform(keys[6], (C,), minval=0.5, maxval=1.5))
    bn2 = (jax.random.uniform(keys[7], (C,), minval=0.5, maxval=1.5),
           jax.random.normal(keys[8], (C,)) * 0.1,
           jax.random.normal(keys[9], (C,)) * 0.1,
           jax.random.uniform(keys[10], (C,), minval=0.5, maxval=1.5))

    out = basic_block(x, w1, w2, bn1, bn2)
    out = jax.block_until_ready(out)

    ref = jax.block_until_ready(basic_block_reference(x, w1, w2, bn1, bn2))
    assert out.shape == (N, C, H, W)
    assert jnp.allclose(out, ref, atol=1e-4, rtol=1e-4)

    print("KERNEL_OK")
</pallas_src>

<mosaic_0001>
module attributes {stable_mosaic.version = 11 : i64} {
  func.func @kernel(%arg0: i32, %arg1: memref<1x4x256xf32, #tpu.memory_space<vmem>>, %arg2: memref<4x36xf32, #tpu.memory_space<vmem>>, %arg3: memref<4x36xf32, #tpu.memory_space<vmem>>, %arg4: memref<4x1xf32, #tpu.memory_space<vmem>>, %arg5: memref<4x1xf32, #tpu.memory_space<vmem>>, %arg6: memref<4x1xf32, #tpu.memory_space<vmem>>, %arg7: memref<4x1xf32, #tpu.memory_space<vmem>>, %arg8: memref<1x4x256xf32, #tpu.memory_space<vmem>>, %arg9: memref<4x290xf32, #tpu.memory_space<vmem>>, %arg10: memref<4x290xf32, #tpu.memory_space<vmem>>) attributes {dimension_semantics = [#tpu.dimension_semantics<parallel>], iteration_bounds = array<i64: 2>, scalar_prefetch = 0 : i64, scratch_operands = 2 : i64, tpu.core_type = #tpu.core_type<tc>, window_params = [{transform_indices = @transform_0, window_bounds = array<i64: 1, 4, 256>}, {pipeline_mode = #tpu.pipeline_mode<synchronous>, transform_indices = @transform_1, window_bounds = array<i64: 4, 36>}, {pipeline_mode = #tpu.pipeline_mode<synchronous>, transform_indices = @transform_2, window_bounds = array<i64: 4, 36>}, {pipeline_mode = #tpu.pipeline_mode<synchronous>, transform_indices = @transform_3, window_bounds = array<i64: 4, 1>}, {pipeline_mode = #tpu.pipeline_mode<synchronous>, transform_indices = @transform_4, window_bounds = array<i64: 4, 1>}, {pipeline_mode = #tpu.pipeline_mode<synchronous>, transform_indices = @transform_5, window_bounds = array<i64: 4, 1>}, {pipeline_mode = #tpu.pipeline_mode<synchronous>, transform_indices = @transform_6, window_bounds = array<i64: 4, 1>}, {transform_indices = @transform_7, window_bounds = array<i64: 1, 4, 256>}]} {
    %cst = arith.constant 0.000000e+00 : f32
    %0 = vector.broadcast %cst : f32 to vector<4x17xf32>
    %cst_0 = arith.constant 0.000000e+00 : f32
    %1 = vector.broadcast %cst_0 : f32 to vector<4x17xf32>
    %c0 = arith.constant 0 : index
    %c0_1 = arith.constant 0 : index
    %2 = vector.load %arg9[%c0, %c0_1] : memref<4x290xf32, #tpu.memory_space<vmem>>, vector<4x17xf32>
    tpu.vector_store %arg9[%c0, %c0_1], %0 {strides = array<i32>} : memref<4x290xf32, #tpu.memory_space<vmem>>, vector<4x17xf32>,
    %c0_2 = arith.constant 0 : index
    %c273 = arith.constant 273 : index
    %3 = vector.load %arg9[%c0_2, %c273] : memref<4x290xf32, #tpu.memory_space<vmem>>, vector<4x17xf32>
    tpu.vector_store %arg9[%c0_2, %c273], %0 {strides = array<i32>} : memref<4x290xf32, #tpu.memory_space<vmem>>, vector<4x17xf32>,
    %c0_3 = arith.constant 0 : index
    %c0_4 = arith.constant 0 : index
    %4 = vector.load %arg10[%c0_3, %c0_4] : memref<4x290xf32, #tpu.memory_space<vmem>>, vector<4x17xf32>
    tpu.vector_store %arg10[%c0_3, %c0_4], %1 {strides = array<i32>} : memref<4x290xf32, #tpu.memory_space<vmem>>, vector<4x17xf32>,
    %c0_5 = arith.constant 0 : index
    %c273_6 = arith.constant 273 : index
    %5 = vector.load %arg10[%c0_5, %c273_6] : memref<4x290xf32, #tpu.memory_space<vmem>>, vector<4x17xf32>
    tpu.vector_store %arg10[%c0_5, %c273_6], %1 {strides = array<i32>} : memref<4x290xf32, #tpu.memory_space<vmem>>, vector<4x17xf32>,
    %c0_7 = arith.constant 0 : index
    %c0_8 = arith.constant 0 : index
    %c0_9 = arith.constant 0 : index
    %6 = vector.load %arg1[%c0_7, %c0_8, %c0_9] : memref<1x4x256xf32, #tpu.memory_space<vmem>>, vector<1x4x256xf32>
    %7 = vector.shape_cast %6 : vector<1x4x256xf32> to vector<4x256xf32>
    %c0_10 = arith.constant 0 : index
    %c17 = arith.constant 17 : index
    %8 = vector.load %arg9[%c0_10, %c17] : memref<4x290xf32, #tpu.memory_space<vmem>>, vector<4x256xf32>
    tpu.vector_store %arg9[%c0_10, %c17], %7 {strides = array<i32>} : memref<4x290xf32, #tpu.memory_space<vmem>>, vector<4x256xf32>,
    %9 = tpu.iota {dimensions = array<i32: 1>} : vector<1x256xi32>
    %c16_i32 = arith.constant 16 : i32
    %c0_i32 = arith.constant 0 : i32
    %10 = arith.cmpi eq, %c16_i32, %c0_i32 : i32
    %c1_i32 = arith.constant 1 : i32
    %11 = arith.select %10, %c1_i32, %c16_i32 : i32
    %12 = vector.broadcast %11 : i32 to vector<1x256xi32>
    %13 = arith.remsi %9, %12 : vector<1x256xi32>
    %c0_i32_11 = arith.constant 0 : i32
    %14 = vector.broadcast %c0_i32_11 : i32 to vector<1x256xi32>
    %15 = arith.cmpi ne, %13, %14 : vector<1x256xi32>
    %c0_i32_12 = arith.constant 0 : i32
    %16 = vector.broadcast %c0_i32_12 : i32 to vector<1x256xi32>
    %17 = arith.cmpi slt, %13, %16 : vector<1x256xi32>
    %c0_i32_13 = arith.constant 0 : i32
    %18 = arith.cmpi slt, %11, %c0_i32_13 : i32
    %19 = vector.broadcast %18 : i1 to vector<1x256xi1>
    %20 = vector.broadcast %19 : vector<1x256xi1> to vector<1x256xi1>
    %21 = arith.xori %17, %20 : vector<1x256xi1>
    %22 = arith.andi %21, %15 : vector<1x256xi1>
    %23 = vector.broadcast %11 : i32 to vector<1x256xi32>
    %24 = arith.addi %13, %23 : vector<1x256xi32>
    %25 = arith.select %22, %24, %13 : vector<1x256xi1>, vector<1x256xi32>
    %c0_i32_14 = arith.constant 0 : i32
    %26 = vector.broadcast %c0_i32_14 : i32 to vector<1x256xi32>
    %27 = arith.cmpi sgt, %25, %26 : vector<1x256xi32>
    %28 = arith.extui %27 : vector<1x256xi1> to vector<1x256xi32>
    %29 = arith.sitofp %28 : vector<1x256xi32> to vector<1x256xf32>
    %c15_i32 = arith.constant 15 : i32
    %30 = vector.broadcast %c15_i32 : i32 to vector<1x256xi32>
    %31 = arith.cmpi slt, %25, %30 : vector<1x256xi32>
    %32 = arith.extui %31 : vector<1x256xi1> to vector<1x256xi32>
    %33 = arith.sitofp %32 : vector<1x256xi32> to vector<1x256xf32>
    %c0_15 = arith.constant 0 : index
    %c0_16 = arith.constant 0 : index
    %34 = vector.load %arg2[%c0_15, %c0_16] : memref<4x36xf32, #tpu.memory_space<vmem>>, vector<4x36xf32>
    %c0_17 = arith.constant 0 : index
    %c0_18 = arith.constant 0 : index
    %35 = vector.load %arg9[%c0_17, %c0_18] : memref<4x290xf32, #tpu.memory_space<vmem>>, vector<4x290xf32>
    %36 = vector.extract_strided_slice %35 {offsets = [0, 0], sizes = [4, 256], strides = [1, 1]} : vector<4x290xf32> to vector<4x256xf32>
    %37 = vector.broadcast %29 : vector<1x256xf32> to vector<4x256xf32>
    %38 = arith.mulf %36, %37 : vector<4x256xf32>
    %39 = vector.extract_strided_slice %35 {offsets = [0, 1], sizes = [4, 256], strides = [1, 1]} : vector<4x290xf32> to vector<4x256xf32>
    %40 = vector.extract_strided_slice %35 {offsets = [0, 2], sizes = [4, 256], strides = [1, 1]} : vector<4x290xf32> to vector<4x256xf32>
    %41 = vector.broadcast %33 : vector<1x256xf32> to vector<4x256xf32>
    %42 = arith.mulf %40, %41 : vector<4x256xf32>
    %43 = vector.extract_strided_slice %35 {offsets = [0, 16], sizes = [4, 256], strides = [1, 1]} : vector<4x290xf32> to vector<4x256xf32>
    %44 = vector.broadcast %29 : vector<1x256xf32> to vector<4x256xf32>
    %45 = arith.mulf %43, %44 : vector<4x256xf32>
    %46 = vector.extract_strided_slice %35 {offsets = [0, 17], sizes = [4, 256], strides = [1, 1]} : vector<4x290xf32> to vector<4x256xf32>
    %47 = vector.extract_strided_slice %35 {offsets = [0, 18], sizes = [4, 256], strides = [1, 1]} : vector<4x290xf32> to vector<4x256xf32>
    %48 = vector.broadcast %33 : vector<1x256xf32> to vector<4x256xf32>
    %49 = arith.mulf %47, %48 : vector<4x256xf32>
    %50 = vector.extract_strided_slice %35 {offsets = [0, 32], sizes = [4, 256], strides = [1, 1]} : vector<4x290xf32> to vector<4x256xf32>
    %51 = vector.broadcast %29 : vector<1x256xf32> to vector<4x256xf32>
    %52 = arith.mulf %50, %51 : vector<4x256xf32>
    %53 = vector.extract_strided_slice %35 {offsets = [0, 33], sizes = [4, 256], strides = [1, 1]} : vector<4x290xf32> to vector<4x256xf32>
    %54 = vector.extract_strided_slice %35 {offsets = [0, 34], sizes = [4, 256], strides = [1, 1]} : vector<4x290xf32> to vector<4x256xf32>
    %55 = vector.broadcast %33 : vector<1x256xf32> to vector<4x256xf32>
    %56 = arith.mulf %54, %55 : vector<4x256xf32>
    %57 = tpu.concatenate %38, %39, %42, %45, %46, %49, %52, %53, %56 in 0 : vector<4x256xf32>, vector<4x256xf32>, vector<4x256xf32>, vector<4x256xf32>, vector<4x256xf32>, vector<4x256xf32>, vector<4x256xf32>, vector<4x256xf32>, vector<4x256xf32> -> vector<36x256xf32>
    %cst_19 = arith.constant dense<0.000000e+00> : vector<4x256xf32>
    %58 = tpu.matmul %34, %57, %cst_19 {dimension_numbers = #tpu.dot_dimension_numbers<[1], [0], [0], [1], [0, 0, 1, 1], [], []>} : vector<4x36xf32>, vector<36x256xf32>, vector<4x256xf32> -> vector<4x256xf32>
    %c0_20 = arith.constant 0 : index
    %c0_21 = arith.constant 0 : index
    %59 = vector.load %arg4[%c0_20, %c0_21] : memref<4x1xf32, #tpu.memory_space<vmem>>, vector<4x1xf32>
    %60 = vector.broadcast %59 : vector<4x1xf32> to vector<4x256xf32>
    %61 = arith.mulf %58, %60 : vector<4x256xf32>
    %c0_22 = arith.constant 0 : index
    %c0_23 = arith.constant 0 : index
    %62 = vector.load %arg5[%c0_22, %c0_23] : memref<4x1xf32, #tpu.memory_space<vmem>>, vector<4x1xf32>
    %63 = vector.broadcast %62 : vector<4x1xf32> to vector<4x256xf32>
    %64 = arith.addf %61, %63 : vector<4x256xf32>
    %cst_24 = arith.constant 0.000000e+00 : f32
    %65 = vector.broadcast %cst_24 : f32 to vector<4x256xf32>
    %66 = arith.maximumf %64, %65 : vector<4x256xf32>
    %c0_25 = arith.constant 0 : index
    %c17_26 = arith.constant 17 : index
    %67 = vector.load %arg10[%c0_25, %c17_26] : memref<4x290xf32, #tpu.memory_space<vmem>>, vector<4x256xf32>
    tpu.vector_store %arg10[%c0_25, %c17_26], %66 {strides = array<i32>} : memref<4x290xf32, #tpu.memory_space<vmem>>, vector<4x256xf32>,
    %c0_27 = arith.constant 0 : index
    %c0_28 = arith.constant 0 : index
    %68 = vector.load %arg3[%c0_27, %c0_28] : memref<4x36xf32, #tpu.memory_space<vmem>>, vector<4x36xf32>
    %c0_29 = arith.constant 0 : index
    %c0_30 = arith.constant 0 : index
    %69 = vector.load %arg10[%c0_29, %c0_30] : memref<4x290xf32, #tpu.memory_space<vmem>>, vector<4x290xf32>
    %70 = vector.extract_strided_slice %69 {offsets = [0, 0], sizes = [4, 256], strides = [1, 1]} : vector<4x290xf32> to vector<4x256xf32>
    %71 = vector.broadcast %29 : vector<1x256xf32> to vector<4x256xf32>
    %72 = arith.mulf %70, %71 : vector<4x256xf32>
    %73 = vector.extract_strided_slice %69 {offsets = [0, 1], sizes = [4, 256], strides = [1, 1]} : vector<4x290xf32> to vector<4x256xf32>
    %74 = vector.extract_strided_slice %69 {offsets = [0, 2], sizes = [4, 256], strides = [1, 1]} : vector<4x290xf32> to vector<4x256xf32>
    %75 = vector.broadcast %33 : vector<1x256xf32> to vector<4x256xf32>
    %76 = arith.mulf %74, %75 : vector<4x256xf32>
    %77 = vector.extract_strided_slice %69 {offsets = [0, 16], sizes = [4, 256], strides = [1, 1]} : vector<4x290xf32> to vector<4x256xf32>
    %78 = vector.broadcast %29 : vector<1x256xf32> to vector<4x256xf32>
    %79 = arith.mulf %77, %78 : vector<4x256xf32>
    %80 = vector.extract_strided_slice %69 {offsets = [0, 17], sizes = [4, 256], strides = [1, 1]} : vector<4x290xf32> to vector<4x256xf32>
    %81 = vector.extract_strided_slice %69 {offsets = [0, 18], sizes = [4, 256], strides = [1, 1]} : vector<4x290xf32> to vector<4x256xf32>
    %82 = vector.broadcast %33 : vector<1x256xf32> to vector<4x256xf32>
    %83 = arith.mulf %81, %82 : vector<4x256xf32>
    %84 = vector.extract_strided_slice %69 {offsets = [0, 32], sizes = [4, 256], strides = [1, 1]} : vector<4x290xf32> to vector<4x256xf32>
    %85 = vector.broadcast %29 : vector<1x256xf32> to vector<4x256xf32>
    %86 = arith.mulf %84, %85 : vector<4x256xf32>
    %87 = vector.extract_strided_slice %69 {offsets = [0, 33], sizes = [4, 256], strides = [1, 1]} : vector<4x290xf32> to vector<4x256xf32>
    %88 = vector.extract_strided_slice %69 {offsets = [0, 34], sizes = [4, 256], strides = [1, 1]} : vector<4x290xf32> to vector<4x256xf32>
    %89 = vector.broadcast %33 : vector<1x256xf32> to vector<4x256xf32>
    %90 = arith.mulf %88, %89 : vector<4x256xf32>
    %91 = tpu.concatenate %72, %73, %76, %79, %80, %83, %86, %87, %90 in 0 : vector<4x256xf32>, vector<4x256xf32>, vector<4x256xf32>, vector<4x256xf32>, vector<4x256xf32>, vector<4x256xf32>, vector<4x256xf32>, vector<4x256xf32>, vector<4x256xf32> -> vector<36x256xf32>
    %cst_31 = arith.constant dense<0.000000e+00> : vector<4x256xf32>
    %92 = tpu.matmul %68, %91, %cst_31 {dimension_numbers = #tpu.dot_dimension_numbers<[1], [0], [0], [1], [0, 0, 1, 1], [], []>} : vector<4x36xf32>, vector<36x256xf32>, vector<4x256xf32> -> vector<4x256xf32>
    %c0_32 = arith.constant 0 : index
    %c0_33 = arith.constant 0 : index
    %93 = vector.load %arg6[%c0_32, %c0_33] : memref<4x1xf32, #tpu.memory_space<vmem>>, vector<4x1xf32>
    %94 = vector.broadcast %93 : vector<4x1xf32> to vector<4x256xf32>
    %95 = arith.mulf %92, %94 : vector<4x256xf32>
    %c0_34 = arith.constant 0 : index
    %c0_35 = arith.constant 0 : index
    %96 = vector.load %arg7[%c0_34, %c0_35] : memref<4x1xf32, #tpu.memory_space<vmem>>, vector<4x1xf32>
    %97 = vector.broadcast %96 : vector<4x1xf32> to vector<4x256xf32>
    %98 = arith.addf %95, %97 : vector<4x256xf32>
    %99 = arith.addf %98, %7 : vector<4x256xf32>
    %cst_36 = arith.constant 0.000000e+00 : f32
    %100 = vector.broadcast %cst_36 : f32 to vector<4x256xf32>
    %101 = arith.maximumf %99, %100 : vector<4x256xf32>
    %c0_37 = arith.constant 0 : index
    %c0_38 = arith.constant 0 : index
    %c0_39 = arith.constant 0 : index
    %102 = vector.load %arg8[%c0_37, %c0_38, %c0_39] : memref<1x4x256xf32, #tpu.memory_space<vmem>>, vector<1x4x256xf32>
    %103 = vector.shape_cast %102 : vector<1x4x256xf32> to vector<4x256xf32>
    %104 = vector.shape_cast %101 : vector<4x256xf32> to vector<1x4x256xf32>
    tpu.vector_store %arg8[%c0_37, %c0_38, %c0_39], %104 {strides = array<i32>} : memref<1x4x256xf32, #tpu.memory_space<vmem>>, vector<1x4x256xf32>,
    return
  }
  func.func @transform_0(%arg0: i32) -> (i32, i32, i32) {
    %c0_i32 = arith.constant 0 : i32
    %c0_i32_0 = arith.constant 0 : i32
    %c0_i32_1 = arith.constant 0 : i32
    return %arg0, %c0_i32, %c0_i32_0 : i32, i32, i32
  }
  func.func @transform_1(%arg0: i32) -> (i32, i32) {
    %c0_i32 = arith.constant 0 : i32
    %c0_i32_0 = arith.constant 0 : i32
    %c0_i32_1 = arith.constant 0 : i32
    return %c0_i32, %c0_i32_0 : i32, i32
  }
  func.func @transform_2(%arg0: i32) -> (i32, i32) {
    %c0_i32 = arith.constant 0 : i32
    %c0_i32_0 = arith.constant 0 : i32
    %c0_i32_1 = arith.constant 0 : i32
    return %c0_i32, %c0_i32_0 : i32, i32
  }
  func.func @transform_3(%arg0: i32) -> (i32, i32) {
    %c0_i32 = arith.constant 0 : i32
    %c0_i32_0 = arith.constant 0 : i32
    %c0_i32_1 = arith.constant 0 : i32
    return %c0_i32, %c0_i32_0 : i32, i32
  }
  func.func @transform_4(%arg0: i32) -> (i32, i32) {
    %c0_i32 = arith.constant 0 : i32
    %c0_i32_0 = arith.constant 0 : i32
    %c0_i32_1 = arith.constant 0 : i32
    return %c0_i32, %c0_i32_0 : i32, i32
  }
  func.func @transform_5(%arg0: i32) -> (i32, i32) {
    %c0_i32 = arith.constant 0 : i32
    %c0_i32_0 = arith.constant 0 : i32
    %c0_i32_1 = arith.constant 0 : i32
    return %c0_i32, %c0_i32_0 : i32, i32
  }
  func.func @transform_6(%arg0: i32) -> (i32, i32) {
    %c0_i32 = arith.constant 0 : i32
    %c0_i32_0 = arith.constant 0 : i32
    %c0_i32_1 = arith.constant 0 : i32
    return %c0_i32, %c0_i32_0 : i32, i32
  }
  func.func @transform_7(%arg0: i32) -> (i32, i32, i32) {
    %c0_i32 = arith.constant 0 : i32
    %c0_i32_0 = arith.constant 0 : i32
    %c0_i32_1 = arith.constant 0 : i32
    return %arg0, %c0_i32, %c0_i32_0 : i32, i32, i32
  }
}

</mosaic_0001>

<bundles_post_ra>
// kernel: tpu_custom_call.1
= control target key start
LH: loop header
LB: loop body
LE: loop exit
PB: predicated region body
PF: predicated region fallthrough
CT: control target
= control target key end

     0   :  { %12 = vsyncpa [#allocation5], 0  ;;  %s1522_s0 = inlined_call_operand.vmem [shape: f32[2,4,256], index: 0, kind: input, shape index: {}]   ;;  %s1523_s1 = inlined_call_operand.vmem [shape: f32[4,36], index: 1, kind: input, shape index: {}]   ;;  %s1524_s2 = inlined_call_operand.vmem [shape: f32[4,36], index: 2, kind: input, shape index: {}]   ;;  %s1525_s3 = inlined_call_operand.vmem [shape: f32[4,1], index: 3, kind: input, shape index: {}]   ;;  %s1526_s4 = inlined_call_operand.vmem [shape: f32[4,1], index: 4, kind: input, shape index: {}]   ;;  %s1527_s5 = inlined_call_operand.vmem [shape: f32[4,1], index: 5, kind: input, shape index: {}]   ;;  %s1528_s6 = inlined_call_operand.vmem [shape: f32[4,1], index: 6, kind: input, shape index: {}]   ;;  %s1529_s7 = inlined_call_operand.hbm [shape: f32[2,4,256], index: 7, kind: output, shape index: {}]  }
   0x1   :  { %14 = vsyncpa [#allocation5 + $0x1], 0  ;;  %s1219_s24 = smov 0   ;;  %s1221_s25 = smov 0  }
   0x2   :  { %s1223_s26 = smov 0   ;;  %s1225_s27 = smov 0  }
   0x3 LB: > { %s1240_s28 = sadd.s32 4294967295, %s1160_s27   ;;  %s924_s29 = sadd.s32 4294967294, %s1160_s27   ;;  %s1160_s27 = sphi %s1225_s27, %s1537_s27   ;;  %s1156_s26 = sphi %s1223_s26, %s1536_s26   ;;  %s1152_s25 = sphi %s1221_s25, %s1535_s25   ;;  %s1148_s24 = sphi %s1219_s24, %s1534_s24  }
   0x4   : > { %s1244_s30 = sadd.s32 1, %s1160_s27   ;;  %s179_s8 = sadd.s32 1, %s1156_s26 }
   0x5   : > { %s176_s9 = ssub.s32 %s1160_s27, %s1244_s30  ;;  %p189_p0 = scmp.ne.s32.totalorder %s1156_s26, %s1152_s25 }
   0x6   : > { %p177_p1 = scmp.eq.s32.totalorder %s176_s9, 0  ;;  %p190_p2 = scmp.eq.s32.totalorder %s1240_s28, 1 }
   0x7   : > { %p195_p3 = scmp.ne.s32.totalorder %s1152_s25, %s1148_s24  ;;  %p196_p4 = scmp.eq.s32.totalorder %s924_s29, 1 }
   0x8   : > { %s1255_s10 = scalar_select %p177_p1, %s1156_s26, %s179_s8  }
   0x9   : > { %p1257_p5 = por %p190_p2, %p189_p0  ;;  %p1261_p6 = por %p196_p4, %p195_p3 }
   0xa   : > { %p927_p7 = scmp.ge.s32.totalorder %s1160_s27, 1  ;;  %p240_p8 = scmp.lt.s32.totalorder %s1160_s27, 3 }
   0xc   : > { %p241_p9 = pnand %p927_p7, %p240_p8 }
   0xd   : > { %p272_p10 = scmp.lt.s32.totalorder (!%p241_p9), %s1240_s28, 1  ;;  %v297_v0 = vlaneseq (!%p241_p9)  ;;  %vm277_vm0 = vcmask (!%p241_p9), 134144   ;;  %vm279_vm1 = vcmask (!%p241_p9), 273544   ;;  %v1162_v1 = vmov (!%p241_p9), 0.0   ;;  %s1163_s18 = smov (!%p241_p9), 17  }
   0xe   : > { %244 = sbr.rel (%p241_p9) target bundleno = 1038 (0x40e), region = 48  ;;  %278 = vst.msk [vmem:[#allocation2] sm:$0xf] (!%p241_p9), %vm277_vm0, %v1162_v1  ;;  %281 = vst.msk [vmem:[#allocation3] sm:$0xf] (!%p241_p9), %vm277_vm0, %v1162_v1  ;;  %584 = vmatprep.mubr.f32.mxu0 (!%p241_p9), %v1162_v1  ;;  %816 = vmatprep.mubr.f32.mxu1 (!%p241_p9), %v1162_v1  ;;  %s1164_s19 = smov (!%p241_p9), 16  }
   0xf   : > { %280 = vst.msk [vmem:[#allocation2 + $0x8] sm:$0xf] (!%p241_p9), %vm279_vm1, %v1162_v1  ;;  %282 = vst.msk [vmem:[#allocation3 + $0x8] sm:$0xf] (!%p241_p9), %vm279_vm1, %v1162_v1  ;;  %v298_v2 = vand.u32 (!%p241_p9), 127, %v297_v0  ;;  %s1165_s20 = smov (!%p241_p9), 2  }
  0x10   : > { %s1166_s21 = smov (!%p241_p9), 32   ;;  %s1167_s22 = smov (!%p241_p9), 18   ;;  %vm292_vm6 = vcmask (!%p241_p9), 1043592   ;;  %vm293_vm7 = vcmask (!%p241_p9), 1047556   ;;  %vm288_vm8 = vcmask (!%p241_p9), 138240   ;;  %vm350_vm10 = vcmask (!%p241_p9), 15360  }
  0x11   : > { %v299_v3 = vadd.s32 (!%p241_p9), 128, %v298_v2  ;;  %v304_v4 = vand.u32 (!%p241_p9), 15, %v298_v2  ;;  %s1168_s23 = smov (!%p241_p9), 34   ;;  %vm1282_vm9 = vmor (!%p241_p9), %vm293_vm7, %vm292_vm6  ;;  %vm368_vm11 = vcmask (!%p241_p9), 146432   ;;  %s1169_s29 = smov (!%p241_p9), 111   ;;  %vm359_vm12 = vcmask (!%p241_p9), 130048  }
  0x12   : > { %s1170_s8 = smov (!%p241_p9), 95   ;;  %s1171_s9 = smov (!%p241_p9), 127   ;;  %vm377_vm13 = vcmask (!%p241_p9), 261120   ;;  %vm386_vm14 = vcmask (!%p241_p9), 277504   ;;  %v1176_v58 = vmov (!%p241_p9), 0   ;;  %vm405_vm15 = vcmask (!%p241_p9), 1039360  }
  0x13   : > { %v311_v6 = vand.u32 (!%p241_p9), 15, %v299_v3  ;;  %vm324_vm2 = vcmp.gt.s32.totalorder (!%p241_p9), %v304_v4, 0  ;;  %vm330_vm3 = vcmp.lt.s32.totalorder (!%p241_p9), %v304_v4, 15  ;;  %s1174_s15 = smov (!%p241_p9), 96   ;;  %s1175_s16 = smov (!%p241_p9), 112   ;;  %1054 = vset.pattern.permute.xlu1 (!%p241_p9), %v1176_v58  ;;  %1055 = vset.pattern.permute.xlu0 (!%p241_p9), %v1176_v58  ;;  %vm486_vm1 = vcmask (!%p241_p9), 777216  }
  0x14   : > { %v931_v7 = vsel (!%p241_p9), %vm324_vm2, 1.0, %v1162_v1  ;;  %v933_v8 = vsel (!%p241_p9), %vm330_vm3, 1.0, %v1162_v1  ;;  %v591_v61 = vld [vmem:[%s1525_s3] sm:$0xf] (!%p241_p9)  ;;  %vm446_vm2 = vcmask (!%p241_p9), 908288   ;;  %vm461_vm3 = vcmask (!%p241_p9), 900096  }
  0x15   : > { %s273_s13 = scalar_select %p272_p10, %s1240_s28, 1  ;;  %vm325_vm4 = vcmp.gt.s32.totalorder %v311_v6, 0  ;;  %vm331_vm5 = vcmp.lt.s32.totalorder %v311_v6, 15  ;;  %v599_v62 = vld [vmem:[%s1526_s4] sm:$0xf]  ;;  %vm434_vm6 = vcmask 916480  }
  0x16   : > { %v932_v9 = vsel %vm325_vm4, 1.0, %v1162_v1  ;;  %v934_v10 = vsel %vm331_vm5, 1.0, %v1162_v1  ;;  %vm503_vm4 = vcmask 1043456   ;;  %vm419_vm5 = vcmask 1031168  }
  0x17   : > { %s946_s14 = sshll.u32 %s273_s13, 3  ;;  %v1278_v11 = vcombine.low %v931_v7, %v932_v9  ;;  %v346_v12 = vcombine.low %v933_v8, %v934_v10  ;;  %s1172_s13 = smov 126   ;;  %vm475_vm7 = vcmask 785408  }
  0x18   : > { %s276_s17 = scalar_lea.vmem %s1522_s0, %s946_s14  ;;  %s1173_s14 = smov 110  }
  0x19   : > { %v1274_v5 = vld [vmem:[%s276_s17] sm:$0xff]  ;;  %356 = vrot.lane.b32.xlu1 %v1278_v11, %s1164_s19  ;;  %s1177_s17 = smov 94  }
  0x1a   : > { %285 = vrot.lane.b32.xlu0 %v1274_v5, %s1163_s18 }
  0x1d   : > { %374 = vrot.lane.b32.xlu1 %v1278_v11, %s1166_s21 }
  0x1e   : > { %347 = vrot.lane.b32.xlu0 %v346_v12, %s1165_s20 }
  0x21   : > { %383 = vrot.lane.b32.xlu1 %v346_v12, %s1168_s23 }
  0x22   : > { %365 = vrot.lane.b32.xlu0 %v346_v12, %s1167_s22 }
  0x8b   : > { %v357_v19 = vpop.permute.xlu1 %356 }
  0x8c   : > { %v286_v13 = vpop.permute.xlu0 %285  ;;  %v1319_v34 = vrot.slane %v357_v19, 4 }
  0x8d   : > { %v287_v15 = vrot.slane %v286_v13, 4 }
  0x8e   : > { %v1328_v39 = vsel %vm359_vm12, %v1319_v34, %v357_v19 }
  0x8f   : > { %v289_v16 = vsel %vm288_vm8, %v287_v15, %v286_v13  ;;  %296 = vst.msk [vmem:[#allocation2 + $0x8] sm:$0xf] %vm277_vm0, %v287_v15  ;;  %v375_v29 = vpop.permute.xlu1 %374 }
  0x90   : > { %295 = vst.msk [vmem:[#allocation2] sm:$0xff] %vm1282_vm9, %v289_v16  ;;  %v348_v17 = vpop.permute.xlu0 %347  ;;  %v1323_v36 = vrot.slane %v375_v29, 4 }
  0x91   : > { %v1292_v21 = vrot.slane %v348_v17, 4 }
  0x92   : > { %v1334_v42 = vsel %vm377_vm13, %v1323_v36, %v375_v29 }
  0x93   : > { %v1306_v27 = vsel %vm350_vm10, %v1292_v21, %v348_v17  ;;  %v384_v44 = vpop.permute.xlu1 %383  ;;  %vm500_vm10 = vcmask 769024  }
  0x94   : > { %v366_v18 = vpop.permute.xlu0 %365  ;;  %v1344_v49 = vrot.slane %v384_v44, 4 }
  0x95   : > { %v1294_v22 = vrot.slane %v366_v18, 4 }
  0x96   : > { %v1290_v20 = vld [vmem:[#allocation2 + $0x8] sm:$0xf]  ;;  %v1349_v53 = vsel %vm386_vm14, %v1344_v49, %v384_v44 }
  0x97   : > { %v1296_v23 = vld [vmem:[#allocation2] sm:$0xff]  ;;  %v398_v24 = vcombine.low %v1290_v20, %v1290_v20  ;;  %v373_v25 = vmul.f32 %v1294_v22, %v1290_v20  ;;  %v1309_v28 = vsel %vm368_vm11, %v1294_v22, %v366_v18  ;;  %v364_v40 = vmul.f32 %v1319_v34, %v1290_v20 }
  0x98   : > { %440 = vrot.lane.b32.xlu0 %v1296_v23, %s1169_s29  ;;  %v354_v30 = vmul.f32 %v1306_v27, %v1296_v23  ;;  %v372_v31 = vmul.f32 %v1309_v28, %v1296_v23  ;;  %v397_v32 = vcombine.low %v1296_v23, %v1296_v23  ;;  %v439_v35 = vcombine.high %v1296_v23, %v1296_v23 }
  0x99   : > { %v1024_v26 = vpack.i.bf16 %v398_v24, %v1296_v23  ;;  %v454_v33 = vcombine.low %v373_v25, %v373_v25  ;;  %v355_v43 = vmul.f32 %v1292_v21, %v1290_v20  ;;  %v363_v45 = vmul.f32 %v1328_v39, %v1296_v23 }
  0x9a   : > { %v412_v37 = vcombine.high %v354_v30, %v354_v30  ;;  %v1029_v41 = vpack.i.bf16 %v1290_v20, %v439_v35  ;;  %v381_v47 = vmul.f32 %v1334_v42, %v1296_v23  ;;  %v427_v48 = vcombine.low %v364_v40, %v364_v40 }
  0x9b   : > { %1025 = vrot.lane.b32.xlu1 %v1024_v26, %s1170_s8  ;;  %v1039_v38 = vpack.i.bf16 %v454_v33, %v372_v31  ;;  %v426_v50 = vcombine.low %v363_v45, %v363_v45  ;;  %v382_v54 = vmul.f32 %v1323_v36, %v1290_v20  ;;  %v453_v55 = vcombine.low %v372_v31, %v372_v31 }
  0x9c   : > { %1020 = vrot.lane.b32.xlu0 %v1024_v26, %s1171_s9  ;;  %v1044_v46 = vpack.i.bf16 %v355_v43, %v412_v37  ;;  %v468_v51 = vcombine.high %v381_v47, %v381_v47  ;;  %v1034_v52 = vpack.i.bf16 %v427_v48, %v363_v45  ;;  %v390_v56 = vmul.f32 %v1349_v53, %v1296_v23 }
  0x9d   : > { %v391_v60 = vmul.f32 %v1344_v49, %v1290_v20  ;;  %v343_v7 = vmul.f32 %v1278_v11, %v1296_v23  ;;  %vm512_vm11 = vcmask 293888  }
  0x9e   : > { %v1049_v57 = vpack.i.bf16 %v382_v54, %v468_v51  ;;  %v493_v59 = vcombine.high %v390_v56, %v390_v56 }
  0x9f   : > { %399 = vrot.lane.b32.xlu1 %v397_v32, %s1171_s9  ;;  %v393_v13 = vcombine.high %v343_v7, %v343_v7 }
  0xa0   : > { %413 = vrot.lane.b32.xlu0 %v354_v30, %s1172_s13 }
  0xa3   : > { %1040 = vrot.lane.b32.xlu1 %v1039_v38, %s1173_s14 }
  0xa4   : > { %1030 = vrot.lane.b32.xlu0 %v1029_v41, %s1169_s29 }
  0xa7   : > { %1045 = vrot.lane.b32.xlu1 %v1044_v46, %s1172_s13 }
  0xa8   : > { %469 = vrot.lane.b32.xlu0 %v381_v47, %s1174_s15 }
  0xab   : > { %428 = vrot.lane.b32.xlu1 %v426_v50, %s1175_s16 }
  0xac   : > { %1035 = vrot.lane.b32.xlu0 %v1034_v52, %s1175_s16 }
  0xaf   : > { %455 = vrot.lane.b32.xlu1 %v453_v55, %s1173_s14 }
  0xb0   : > { %1050 = vrot.lane.b32.xlu0 %v1049_v57, %s1174_s15 }
  0xb3   : > { %480 = vrot.lane.b32.xlu1 %v397_v32, %s1170_s8 }
  0xb4   : > { %496 = vrot.lane.b32.xlu0 %v493_v59, %s1177_s17 }
  0xb7   : > { %498 = vrot.lane.b32.xlu1 %v391_v60, %s1177_s17 }
  0xb8   : > { %494 = vrot.lane.b32.xlu0 %v390_v56, %s1177_s17 }
  0xbb   : > { %594 = vperm.xlu1 %1054, %v591_v61  }
  0xbc   : > { %602 = vperm.xlu0 %1055, %v599_v62  }
 0x10a   : > { %v441_v63 = vpop.permute.xlu0 %440 }
 0x10d   : > { %v1026_v0 = vpop.permute.xlu1 %1025 }
 0x10e   : > { %v1021_v1 = vpop.permute.xlu0 %1020  ;;  %v1028_v31 = vunpack.i.h.bf16 %v1026_v0  ;;  %v1027_v32 = vunpack.i.l.bf16 %v1026_v0 }
 0x10f   : > { %v1023_v8 = vunpack.i.h.bf16 %v1021_v1  ;;  %v1022_v9 = vunpack.i.l.bf16 %v1021_v1 }
 0x110   : > { %v488_v59 = vsel %vm486_vm1, %v1027_v32, %v1028_v31 }
 0x111   : > { %v400_v2 = vpop.permute.xlu1 %399  ;;  %v407_v18 = vsel %vm405_vm15, %v1022_v9, %v1023_v8 }
 0x112   : > { %v414_v3 = vpop.permute.xlu0 %413  ;;  %v406_v19 = vsel %vm405_vm15, %v400_v2, %v1022_v9  ;;  %v505_v33 = vsel %vm503_vm4, %v393_v13, %v407_v18  ;;  %v336_v9 = vld [vmem:[%s1523_s1] sm:$0xf] }
 0x113   : > { %v504_v45 = vsel %vm503_vm4, %v343_v7, %v406_v19 }
 0x115   : > { %v1041_v4 = vpop.permute.xlu1 %1040 }
 0x116   : > { %v1031_v6 = vpop.permute.xlu0 %1030  ;;  %v1043_v20 = vunpack.i.h.bf16 %v1041_v4  ;;  %v1042_v23 = vunpack.i.l.bf16 %v1041_v4 }
 0x117   : > { %v1033_v25 = vunpack.i.h.bf16 %v1031_v6  ;;  %v1032_v26 = vunpack.i.l.bf16 %v1031_v6 }
 0x118   : > { %v463_v47 = vsel %vm461_vm3, %v1042_v23, %v1043_v20 }
 0x119   : > { %v1046_v10 = vpop.permute.xlu1 %1045  ;;  %v448_v48 = vsel %vm446_vm2, %v1032_v26, %v1033_v25  ;;  %v447_v60 = vsel %vm446_vm2, %v441_v63, %v1032_v26 }
 0x11a   : > { %v470_v12 = vpop.permute.xlu0 %469  ;;  %v1048_v15 = vunpack.i.h.bf16 %v1046_v10  ;;  %v1047_v16 = vunpack.i.l.bf16 %v1046_v10  ;;  %v509_v0 = vsel %vm503_vm4, %v448_v48, %v463_v47 }
 0x11c   : > { %v421_v37 = vsel %vm419_vm5, %v1047_v16, %v1048_v15  ;;  %v420_v40 = vsel %vm419_vm5, %v414_v3, %v1047_v16 }
 0x11d   : > { %v429_v17 = vpop.permute.xlu1 %428 }
 0x11e   : > { %v1036_v24 = vpop.permute.xlu0 %1035 }
 0x11f   : > { %v1038_v29 = vunpack.i.h.bf16 %v1036_v24  ;;  %v1037_v30 = vunpack.i.l.bf16 %v1036_v24 }
 0x121   : > { %v456_v35 = vpop.permute.xlu1 %455  ;;  %v436_v38 = vsel %vm434_vm6, %v1037_v30, %v1038_v29  ;;  %v435_v41 = vsel %vm434_vm6, %v429_v17, %v1037_v30 }
 0x122   : > { %v1051_v43 = vpop.permute.xlu0 %1050  ;;  %v507_v44 = vsel %vm503_vm4, %v421_v37, %v436_v38  ;;  %v506_v46 = vsel %vm503_vm4, %v420_v40, %v435_v41  ;;  %v462_v54 = vsel %vm461_vm3, %v456_v35, %v1042_v23 }
 0x123   : > { %v1053_v50 = vunpack.i.h.bf16 %v1051_v43  ;;  %v1052_v51 = vunpack.i.l.bf16 %v1051_v43  ;;  %v948_v52 = vpack.c.bf16 %v507_v44, %v505_v33  ;;  %v950_v55 = vpack.c.bf16 %v506_v46, %v504_v45 }
 0x124   : > { %v508_v2 = vsel %vm503_vm4, %v447_v60, %v462_v54 }
 0x125   : > { %v477_v56 = vsel %vm475_vm7, %v1052_v51, %v1053_v50  ;;  %v481_v57 = vpop.permute.xlu1 %480  ;;  %v476_v58 = vsel %vm475_vm7, %v470_v12, %v1052_v51  ;;  %949 = vmatprep.subr.bf16.mxu0 %v948_v52 }
 0x126   : > { %v487_v61 = vsel %vm486_vm1, %v481_v57, %v1027_v32  ;;  %v497_v62 = vpop.permute.xlu0 %496  ;;  %951 = vmatpush1.bf16.msra.mxu0 %v950_v55  ;;  %v511_v1 = vsel %vm503_vm4, %v477_v56, %v488_v59 }
 0x127   : > { %v510_v3 = vsel %vm503_vm4, %v476_v58, %v487_v61  ;;  %v952_v4 = vpack.c.bf16 %v511_v1, %v509_v0 }
 0x128   : > { %v954_v6 = vpack.c.bf16 %v510_v3, %v508_v2 }
 0x129   : > { %v499_v7 = vpop.permute.xlu1 %498  ;;  %953 = vmatprep.subr.bf16.mxu0 %v952_v4 }
 0x12a   : > { %v502_v8 = vsel %vm500_vm10, %v497_v62, %v499_v7  ;;  %v495_v63 = vpop.permute.xlu0 %494  ;;  %955 = vmatpush1.bf16.msra.mxu0 %v954_v6 }
 0x12b   : > { %935 = vmatprep.subr.msk.mxu0 %vm503_vm4, %v502_v8  ;;  %v501_v10 = vsel %vm500_vm10, %v495_v63, %v497_v62 }
 0x12e   : > { %936 = vmatpush1.msk.msra.mxu0 %vm503_vm4, %v501_v10 }
 0x12f   : > { %937 = vmatmul.mubr.msk.f32.vlgmr.msra.gmra.mrb[0].mxu0 %vm512_vm11, %v336_v9 }
 0x13a   : > { %v595_v12 = vpop.permute.xlu1 %594 }
 0x13b   : > { %v603_v15 = vpop.permute.xlu0 %602 }
 0x202   : > { %v586_v13 = vpop.f32.mrb[0].mxu0 }
 0x203   : > { %v597_v16 = vmul.f32 %v595_v12, %v586_v13  ;;  %v588_v17 = vpop.f32.mrb[1].mxu0 }
 0x204   : > { %v598_v18 = vmul.f32 %v595_v12, %v588_v17 }
 0x205   : > { %v605_v19 = vadd.f32 %v603_v15, %v597_v16 }
 0x206   : > { %v606_v20 = vadd.f32 %v603_v15, %v598_v18 }
 0x207   : > { %v607_v23 = vmax.f32 %v605_v19, 0.0 }
 0x208   : > { %v608_v24 = vmax.f32 %v606_v20, 0.0 }
 0x20a   : > { %v611_v25 = vcombine.low %v607_v23, %v608_v24 }
 0x20c   : > { %612 = vrot.lane.b32.xlu1 %v611_v25, %s1163_s18 }
 0x27e   : > { %v613_v26 = vpop.permute.xlu1 %612 }
 0x27f   : > { %v614_v29 = vrot.slane %v613_v26, 4 }
 0x281   : > { %v615_v30 = vsel %vm288_vm8, %v614_v29, %v613_v26  ;;  %619 = vst.msk [vmem:[#allocation3 + $0x8] sm:$0xf] %vm277_vm0, %v614_v29 }
 0x282   : > { %618 = vst.msk [vmem:[#allocation3] sm:$0xff] %vm1282_vm9, %v615_v30 }
 0x288   : > { %v622_v31 = vld [vmem:[#allocation3 + $0x8] sm:$0xf] }
 0x289   : > { %v621_v32 = vld [vmem:[#allocation3] sm:$0xff]  ;;  %v640_v33 = vcombine.low %v622_v31, %v622_v31  ;;  %v629_v37 = vmul.f32 %v622_v31, %v1294_v22  ;;  %v627_v22 = vmul.f32 %v622_v31, %v1319_v34  ;;  %v625_v47 = vmul.f32 %v622_v31, %v1292_v21 }
 0x28a   : > { %679 = vrot.lane.b32.xlu1 %v621_v32, %s1169_s29  ;;  %v639_v38 = vcombine.low %v621_v32, %v621_v32  ;;  %v624_v40 = vmul.f32 %v621_v32, %v1306_v27  ;;  %v628_v41 = vmul.f32 %v621_v32, %v1309_v28  ;;  %v678_v14 = vcombine.high %v621_v32, %v621_v32 }
 0x28b   : > { %v1061_v35 = vpack.i.bf16 %v640_v33, %v621_v32  ;;  %v692_v43 = vcombine.low %v629_v37, %v629_v37  ;;  %v626_v28 = vmul.f32 %v621_v32, %v1328_v39  ;;  %v630_v48 = vmul.f32 %v621_v32, %v1334_v42 }
 0x28c   : > { %v653_v45 = vcombine.high %v624_v40, %v624_v40  ;;  %v1066_v46 = vpack.i.bf16 %v622_v31, %v678_v14  ;;  %v667_v50 = vcombine.low %v627_v22, %v627_v22  ;;  %v631_v21 = vmul.f32 %v622_v31, %v1323_v36  ;;  %v823_v36 = vld [vmem:[%s1527_s5] sm:$0xf] }
 0x28d   : > { %1062 = vrot.lane.b32.xlu0 %v1061_v35, %s1170_s8  ;;  %v1076_v44 = vpack.i.bf16 %v692_v43, %v628_v41  ;;  %v666_v51 = vcombine.low %v626_v28, %v626_v28  ;;  %v705_v54 = vcombine.high %v630_v48, %v630_v48  ;;  %v691_v34 = vcombine.low %v628_v41, %v628_v41 }
 0x28e   : > { %1057 = vrot.lane.b32.xlu1 %v1061_v35, %s1171_s9  ;;  %v1081_v27 = vpack.i.bf16 %v625_v47, %v653_v45  ;;  %v1071_v52 = vpack.i.bf16 %v667_v50, %v626_v28  ;;  %v632_v39 = vmul.f32 %v621_v32, %v1349_v53  ;;  %v633_v56 = vmul.f32 %v622_v31, %v1344_v49  ;;  %v831_v53 = vld [vmem:[%s1528_s6] sm:$0xf] }
 0x28f   : > { %v1086_v55 = vpack.i.bf16 %v631_v21, %v705_v54  ;;  %v623_v4 = vmul.f32 %v621_v32, %v1278_v11 }
 0x290   : > { %v728_v42 = vcombine.high %v632_v39, %v632_v39 }
 0x291   : > { %641 = vrot.lane.b32.xlu0 %v639_v38, %s1171_s9  ;;  %v635_v15 = vcombine.high %v623_v4, %v623_v4 }
 0x292   : > { %654 = vrot.lane.b32.xlu1 %v624_v40, %s1172_s13 }
 0x295   : > { %1077 = vrot.lane.b32.xlu0 %v1076_v44, %s1173_s14 }
 0x296   : > { %1067 = vrot.lane.b32.xlu1 %v1066_v46, %s1169_s29 }
 0x299   : > { %1082 = vrot.lane.b32.xlu0 %v1081_v27, %s1172_s13 }
 0x29a   : > { %706 = vrot.lane.b32.xlu1 %v630_v48, %s1174_s15 }
 0x29d   : > { %668 = vrot.lane.b32.xlu0 %v666_v51, %s1175_s16 }
 0x29e   : > { %1072 = vrot.lane.b32.xlu1 %v1071_v52, %s1175_s16 }
 0x2a1   : > { %693 = vrot.lane.b32.xlu0 %v691_v34, %s1173_s14 }
 0x2a2   : > { %1087 = vrot.lane.b32.xlu1 %v1086_v55, %s1174_s15  ;;  %s269_s15 = sand.u32 1, %s1152_s25  }
 0x2a3   : > { %s928_s16 = sshll.u32 %s269_s15, 3  ;;  %s851_s18 = scalar_lea.sflag [#allocation5], %s269_s15 }
 0x2a4   : > { %s271_s20 = scalar_lea.vmem [#allocation4], %s928_s16 }
 0x2a5   : > { %716 = vrot.lane.b32.xlu0 %v639_v38, %s1170_s8  ;;  %s865_s21 = sshll.u32 %s271_s20, 4  ;;  %s1482_s21 = int_to_ptr.vmem [resolvable:$true] %s865_s21 }
 0x2a6   : > { %731 = vrot.lane.b32.xlu1 %v728_v42, %s1177_s17  ;;  %s1098_s29 = scalar_lea.vmem %s1482_s21, 128 }
 0x2a7   : > { %p1099_p11 = scmp.ne.s32.totalorder %s1482_s21, %s1098_s29 }
 0x2a9   : > { %733 = vrot.lane.b32.xlu0 %v633_v56, %s1177_s17  ;;  %v620_v56 = vld [vmem:[%s1524_s2] sm:$0xf]  ;;  %p1100_p12 = pnand %p1099_p11, %p1257_p5 }
 0x2aa   : > { %729 = vrot.lane.b32.xlu1 %v632_v39, %s1177_s17  ;;  %s947_s17 = sshll.u32 %s1240_s28, 7  ;;  %s1178_s28 = smov [#allocation4]  }
 0x2ab   : > { %s1480_s19 = scalar_lea.hbm %s1529_s7, %s947_s17  ;;  %p1101_p13 = pneg %p1100_p12 }
 0x2ac   : > { %s1102_s9 = sshll.u32 %s1178_s28, 4  ;;  %s1103_s9 = int_to_ptr.vmem [resolvable:$false] %s1102_s9 }
 0x2ad   : > { %826 = vperm.xlu0 %1055, %v823_v36   ;;  %s1104_s13 = scalar_lea.vmem %s1103_s9, 256  ;;  %p1105_p0 = scmp.lt.s32.totalorder %s1482_s21, %s1103_s9 }
 0x2ae   : > { %834 = vperm.xlu1 %1054, %v831_v53   ;;  %p1106_p1 = scmp.lt.s32.totalorder %s1104_s13, %s1098_s29 }
 0x2b0   : > { %p1107_p2 = por %p1106_p1, %p1105_p0 }
 0x2b2   : > { %p1108_p3 = pnand %p1107_p2, %p1101_p13 }
 0x2fc   : > { %v680_v57 = vpop.permute.xlu1 %679 }
 0x2ff   : > { %v1063_v58 = vpop.permute.xlu0 %1062 }
 0x300   : > { %v1058_v59 = vpop.permute.xlu1 %1057  ;;  %v1065_v20 = vunpack.i.h.bf16 %v1063_v58  ;;  %v1064_v23 = vunpack.i.l.bf16 %v1063_v58 }
 0x301   : > { %v1060_v0 = vunpack.i.h.bf16 %v1058_v59  ;;  %v1059_v1 = vunpack.i.l.bf16 %v1058_v59 }
 0x302   : > { %v723_v45 = vsel %vm486_vm1, %v1064_v23, %v1065_v20 }
 0x303   : > { %v642_v60 = vpop.permute.xlu0 %641  ;;  %v648_v63 = vsel %vm405_vm15, %v1059_v1, %v1060_v0 }
 0x304   : > { %v655_v61 = vpop.permute.xlu1 %654  ;;  %v647_v9 = vsel %vm405_vm15, %v642_v60, %v1059_v1  ;;  %v738_v24 = vsel %vm503_vm4, %v635_v15, %v648_v63  ;;  %v839_v60 = vcombine.high %v1274_v5, %v1274_v5 }
 0x305   : > { %v737_v35 = vsel %vm503_vm4, %v623_v4, %v647_v9 }
 0x307   : > { %v1078_v49 = vpop.permute.xlu0 %1077 }
 0x308   : > { %v1068_v62 = vpop.permute.xlu1 %1067  ;;  %v1080_v10 = vunpack.i.h.bf16 %v1078_v49  ;;  %v1079_v12 = vunpack.i.l.bf16 %v1078_v49 }
 0x309   : > { %v1070_v16 = vunpack.i.h.bf16 %v1068_v62  ;;  %v1069_v17 = vunpack.i.l.bf16 %v1068_v62 }
 0x30a   : > { %v700_v31 = vsel %vm461_vm3, %v1079_v12, %v1080_v10 }
 0x30b   : > { %v1083_v2 = vpop.permute.xlu0 %1082  ;;  %v686_v38 = vsel %vm446_vm2, %v1069_v17, %v1070_v16  ;;  %v685_v27 = vsel %vm446_vm2, %v680_v57, %v1069_v17 }
 0x30c   : > { %v707_v3 = vpop.permute.xlu1 %706  ;;  %v1085_v6 = vunpack.i.h.bf16 %v1083_v2  ;;  %v1084_v7 = vunpack.i.l.bf16 %v1083_v2  ;;  %v742_v50 = vsel %vm503_vm4, %v686_v38, %v700_v31 }
 0x30e   : > { %v661_v25 = vsel %vm419_vm5, %v1084_v7, %v1085_v6  ;;  %v660_v29 = vsel %vm419_vm5, %v655_v61, %v1084_v7 }
 0x30f   : > { %v669_v8 = vpop.permute.xlu0 %668 }
 0x310   : > { %v1073_v13 = vpop.permute.xlu1 %1072 }
 0x311   : > { %v1075_v18 = vunpack.i.h.bf16 %v1073_v13  ;;  %v1074_v19 = vunpack.i.l.bf16 %v1073_v13 }
 0x313   : > { %v694_v11 = vpop.permute.xlu0 %693  ;;  %v675_v26 = vsel %vm434_vm6, %v1074_v19, %v1075_v18  ;;  %v674_v30 = vsel %vm434_vm6, %v669_v8, %v1074_v19 }
 0x314   : > { %v1088_v32 = vpop.permute.xlu1 %1087  ;;  %v740_v33 = vsel %vm503_vm4, %v661_v25, %v675_v26  ;;  %v739_v37 = vsel %vm503_vm4, %v660_v29, %v674_v30  ;;  %v699_v14 = vsel %vm461_vm3, %v694_v11, %v1079_v12 }
 0x315   : > { %v1090_v40 = vunpack.i.h.bf16 %v1088_v32  ;;  %v1089_v41 = vunpack.i.l.bf16 %v1088_v32  ;;  %v956_v43 = vpack.c.bf16 %v740_v33, %v738_v24  ;;  %v958_v44 = vpack.c.bf16 %v739_v37, %v737_v35 }
 0x316   : > { %v741_v52 = vsel %vm503_vm4, %v685_v27, %v699_v14 }
 0x317   : > { %v713_v46 = vsel %vm475_vm7, %v1089_v41, %v1090_v40  ;;  %v712_v22 = vsel %vm475_vm7, %v707_v3, %v1089_v41  ;;  %v717_v47 = vpop.permute.xlu0 %716  ;;  %957 = vmatprep.subr.bf16.mxu1 %v956_v43 }
 0x318   : > { %v722_v28 = vsel %vm486_vm1, %v717_v47, %v1064_v23  ;;  %v732_v48 = vpop.permute.xlu1 %731  ;;  %959 = vmatpush1.bf16.msra.mxu1 %v958_v44  ;;  %v744_v51 = vsel %vm503_vm4, %v713_v46, %v723_v45 }
 0x319   : > { %v743_v54 = vsel %vm503_vm4, %v712_v22, %v722_v28  ;;  %v960_v21 = vpack.c.bf16 %v744_v51, %v742_v50 }
 0x31a   : > { %v962_v34 = vpack.c.bf16 %v743_v54, %v741_v52 }
 0x31b   : > { %v734_v55 = vpop.permute.xlu0 %733  ;;  %961 = vmatprep.subr.bf16.mxu1 %v960_v21 }
 0x31c   : > { %v736_v39 = vsel %vm500_vm10, %v732_v48, %v734_v55  ;;  %v730_v42 = vpop.permute.xlu1 %729  ;;  %963 = vmatpush1.bf16.msra.mxu1 %v962_v34 }
 0x31d   : > { %938 = vmatprep.subr.msk.mxu1 %vm503_vm4, %v736_v39  ;;  %v735_v36 = vsel %vm500_vm10, %v730_v42, %v732_v48 }
 0x320   : > { %939 = vmatpush1.msk.msra.mxu1 %vm503_vm4, %v735_v36 }
 0x321   : > { %940 = vmatmul.mubr.msk.f32.vlgmr.msra.gmra.mrb[0].mxu1 %vm512_vm11, %v620_v56 }
 0x32c   : > { %v827_v53 = vpop.permute.xlu0 %826 }
 0x32d   : > { %v835_v61 = vpop.permute.xlu1 %834 }
 0x3f4   : > { %v818_v57 = vpop.f32.mrb[0].mxu1 }
 0x3f5   : > { %v829_v58 = vmul.f32 %v827_v53, %v818_v57  ;;  %v820_v59 = vpop.f32.mrb[1].mxu1 }
 0x3f6   : > { %v830_v49 = vmul.f32 %v827_v53, %v820_v59 }
 0x3f7   : > { %v837_v62 = vadd.f32 %v835_v61, %v829_v58 }
 0x3f8   : > { %v838_v0 = vadd.f32 %v835_v61, %v830_v49 }
 0x3f9   : > { %v841_v1 = vadd.f32 %v837_v62, %v1274_v5 }
 0x3fa   : > { %v842_v2 = vadd.f32 %v839_v60, %v838_v0 }
 0x3fb   : > { %v843_v3 = vmax.f32 %v841_v1, 0.0 }
 0x3fc   : > { %v844_v4 = vmax.f32 %v842_v2, 0.0 }
 0x3fe   : > { %v847_v6 = vcombine.low %v843_v3, %v844_v4 }
 0x400   : > { %849 = vst [vmem:[%s271_s20] sm:$0xff] %v847_v6 }
 0x401   : > { %1111 = shalt.err (!%p1108_p3)
}
 0x402   : > { %s1112_s8 = scalar_lea.hbm %s1480_s19, 128  ;;  %s1116_s16 = scalar_lea.hbm %s1529_s7, 256 }
 0x403   : > { %p1113_p4 = scmp.ne.s32.totalorder %s1480_s19, %s1112_s8  ;;  %p1117_p9 = scmp.lt.u32.totalorder %s1480_s19, %s1529_s7 }
 0x404   : > { %p1118_p10 = scmp.lt.u32.totalorder %s1116_s16, %s1112_s8  ;;  %p1120_p12 = scmp.lt.u32.totalorder %s1112_s8, %s1480_s19 }
 0x405   : > { %p1114_p7 = pnand %p1113_p4, %p1257_p5 }
 0x406   : > { %p1119_p11 = por %p1118_p10, %p1117_p9 }
 0x407   : > { %p1115_p8 = pneg %p1114_p7 }
 0x408   : > { %p1121_p13 = por %p1120_p12, %p1119_p11 }
 0x40a   : > { %p1122_p0 = pnand %p1121_p13, %p1115_p8 }
 0x40c   : > { %1125 = shalt.err (!%p1122_p0)
}
 0x40d   : > { %964 = dma.vmem_to_hbm [thread:$0]  (%p1257_p5), %s1482_s21, 128, %s1480_s19, %s851_s18  }
 0x40e PF: > { %p970_p1 = scmp.ge.s32.totalorder %s1160_s27, 2  ;;  %s877_s22 = sand.u32 1, %s1148_s24  }
 0x40f   : > { %s878_s23 = scalar_lea.sflag [#allocation5], %s877_s22 }
 0x410   : > { %p967_p2 = pnand %p970_p1, %p1261_p6 }
 0x412   : > { %1143 = dma.done.wait (!%p967_p2), %s878_s23, 128  }
 0x413   : > { %1145 = vsyncadd (!%p967_p2), %s878_s23, 4294967168  ;;  %p17_p3 = scmp.ge.s32.totalorder %s1244_s30, 4   ;;  %s1534_s24 = smov %s1152_s25 }
 0x414   : > { %s1535_s25 = smov %s1156_s26  ;;  %s1536_s26 = smov %s1255_s10 }
 0x415   : > { %s1537_s27 = smov %s1244_s30  ;;  %19 = sbr.rel (!%p17_p3) target bundleno = 3 (0x3), region = 83 }
 0x41c   :  { %883 = vsyncpa [#allocation5], 1 }
 0x41d   :  { %885 = vsyncpa [#allocation5 + $0x1], 1 }

</bundles_post_ra>
